<compile_context>
chip_gen: v7x
topology: tpu7x:2x2x1
jax: 0.10.0
libtpu: 0.0.40
codegen_flags: <defaults>
</compile_context>

<pallas_src>
import math

import jax
import jax.numpy as jnp
from jax import lax
from jax.experimental import pallas as pl
from jax.experimental.pallas import tpu as pltpu


def _round_up(x, m):
    return ((x + m - 1) // m) * m


def classifier_kernel(x_ref, w1_ref, b1_ref, w2_ref, b2_ref, w3_ref, b3_ref, o_ref):
    # Batch lives on the LANE axis throughout: z1 = W1 @ x^T is expressed as a
    # contraction over E (dim 1 of both operands), so x stays [tm, E] in VMEM.
    z1 = jnp.tanh(
        lax.dot_general(
            w1_ref[...], x_ref[...],
            dimension_numbers=(((1,), (1,)), ((), ())),
            preferred_element_type=jnp.float32,
        )
        + b1_ref[...]
    )
    # drop1: identity (eval mode)
    z2 = jnp.tanh(
        jnp.dot(w2_ref[...], z1, preferred_element_type=jnp.float32) + b2_ref[...]
    )
    # drop2: identity (eval mode)
    logits = jnp.dot(w3_ref[...], z2, preferred_element_type=jnp.float32) + b3_ref[...]
    o_ref[...] = jax.nn.sigmoid(logits).astype(o_ref.dtype)


def _vmem_capacity_bytes():
    try:
        info = pltpu.get_tpu_info()
        cap = getattr(info, "vmem_capacity_bytes", None)
        if cap:
            return int(cap)
    except Exception:
        pass
    return 64 * 1024 * 1024  # conservative fallback (v7x per-TC)


def _derive_tile(B, E, tm_cap):
    """Pick a 128-aligned batch tile from the VMEM budget and the batch size."""
    lane_e = max(_round_up(E, 128), 128)           # x lane dim pads to 128 in VMEM
    vmem_cap = _vmem_capacity_bytes()
    budget = vmem_cap // 2                          # leave half of VMEM as headroom
    # Per batch-row VMEM bytes: double-buffered f32 x tile + double-buffered out tile
    # (output sublane dim 2 pads to 8).
    per_row = 2 * lane_e * 4 + 2 * 8 * 4
    tm_vmem = max(128, (budget // per_row) // 128 * 128)
    # Keep >= ~4 grid steps on large batches so the "parallel" batch axis can be
    # sharded across both TensorCores on v7x (and amortizes per-step overhead).
    tm_split = max(128, _round_up(pl.cdiv(B, 4), 128))
    tm_eff = max(128, min(tm_cap, tm_vmem, tm_split))
    return tm_eff, lane_e, vmem_cap


def classifier_forward(x, params, *, tm=32768):
    """Fused 3-layer MLP forward (eval mode). x: [B, E] float32 -> [B, 2] float32."""
    B, E = x.shape
    w1, b1, w2, b2, w3, b3 = (
        params["w1"], params["b1"], params["w2"],
        params["b2"], params["w3"], params["b3"],
    )

    tm_eff, lane_e, vmem_cap = _derive_tile(B, E, tm)
    grid = (pl.cdiv(B, tm_eff),)   # ragged last block handled by Pallas (masked store)

    # Scoped-VMEM: double-buffered x tile (lane-padded f32) + output tiles + slack.
    est = 2 * tm_eff * lane_e * 4 + 2 * 8 * tm_eff * 4 + (2 << 20)
    vmem_limit = int(min(max(est, 16 << 20), max(vmem_cap - (8 << 20), 32 << 20)))

    out = pl.pallas_call(
        classifier_kernel,
        out_shape=jax.ShapeDtypeStruct((2, B), jnp.float32),
        grid_spec=pltpu.PrefetchScalarGridSpec(
            num_scalar_prefetch=0,
            grid=grid,
            in_specs=[
                pl.BlockSpec((tm_eff, E), lambda i: (i, 0)),   # x tile (f32, streamed)
                pl.BlockSpec((8, E), lambda i: (0, 0)),        # W1, VMEM-resident
                pl.BlockSpec((8, 1), lambda i: (0, 0)),        # b1
                pl.BlockSpec((8, 8), lambda i: (0, 0)),        # W2
                pl.BlockSpec((8, 1), lambda i: (0, 0)),        # b2
                pl.BlockSpec((2, 8), lambda i: (0, 0)),        # W3
                pl.BlockSpec((2, 1), lambda i: (0, 0)),        # b3
            ],
            out_specs=pl.BlockSpec((2, tm_eff), lambda i: (0, i)),  # lane-dense [2, B]
        ),
        compiler_params=pltpu.CompilerParams(
            dimension_semantics=("parallel",),   # v7x: batch tiles across both TCs
            vmem_limit_bytes=vmem_limit,
        ),
    )(x, w1, b1, w2, b2, w3, b3)

    # Ragged-tail columns (if any) are garbage and are dropped here — keep this invariant.
    return out[:, :B].T


def xavier_uniform(key, fan_out, fan_in):
    # Matches torch.nn.init.xavier_uniform_ on a (fan_out, fan_in) weight.
    bound = math.sqrt(6.0 / (fan_in + fan_out))
    return jax.random.uniform(
        key, (fan_out, fan_in), minval=-bound, maxval=bound, dtype=jnp.float32
    )


def init_params(key, embed_size):
    k1, k2, k3 = jax.random.split(key, 3)
    return {
        "w1": xavier_uniform(k1, 8, embed_size),    # hid1.weight: (8, E)
        "b1": jnp.zeros((8, 1), jnp.float32),
        "w2": xavier_uniform(k2, 8, 8),             # hid2.weight: (8, 8)
        "b2": jnp.zeros((8, 1), jnp.float32),
        "w3": xavier_uniform(k3, 2, 8),             # oupt.weight: (2, 8)
        "b3": jnp.zeros((2, 1), jnp.float32),
    }


def reference_forward(x, params):
    # Pure-JAX reference of the PyTorch forward (eval mode), all f32.
    hp = lax.Precision.HIGHEST
    z = jnp.tanh(jnp.dot(x, params["w1"].T, precision=hp) + params["b1"].T)
    z = jnp.tanh(jnp.dot(z, params["w2"].T, precision=hp) + params["b2"].T)
    z = jax.nn.sigmoid(jnp.dot(z, params["w3"].T, precision=hp) + params["b3"].T)
    return z


if __name__ == "__main__":
    embed_size = 32

    key = jax.random.PRNGKey(0)
    kx, kp = jax.random.split(key)
    params = init_params(kp, embed_size)

    # batch=8 (tiny, single ragged tile) and batch=200 (two tiles, ragged last block).
    for batch in (8, 200):
        x = jax.random.normal(
            jax.random.fold_in(kx, batch), (batch, embed_size), dtype=jnp.float32
        )
        out = jax.block_until_ready(classifier_forward(x, params))
        ref = reference_forward(x, params)
        assert out.shape == (batch, 2)
        assert jnp.allclose(out, ref, atol=2e-3, rtol=2e-3), "mismatch vs reference"

    print("KERNEL_OK")
</pallas_src>

<mosaic_0001>
module attributes {stable_mosaic.version = 11 : i64} {
  func.func @classifier_kernel(%arg0: i32, %arg1: memref<128x32xf32, #tpu.memory_space<vmem>>, %arg2: memref<8x32xf32, #tpu.memory_space<vmem>>, %arg3: memref<8x1xf32, #tpu.memory_space<vmem>>, %arg4: memref<8x8xf32, #tpu.memory_space<vmem>>, %arg5: memref<8x1xf32, #tpu.memory_space<vmem>>, %arg6: memref<2x8xf32, #tpu.memory_space<vmem>>, %arg7: memref<2x1xf32, #tpu.memory_space<vmem>>, %arg8: memref<2x128xf32, #tpu.memory_space<vmem>>) attributes {dimension_semantics = [#tpu.dimension_semantics<parallel>], iteration_bounds = array<i64: 1>, scalar_prefetch = 0 : i64, scratch_operands = 0 : i64, tpu.core_type = #tpu.core_type<tc>, window_params = [{transform_indices = @transform_0, window_bounds = array<i64: 128, 32>}, {pipeline_mode = #tpu.pipeline_mode<synchronous>, transform_indices = @transform_1, window_bounds = array<i64: 8, 32>}, {pipeline_mode = #tpu.pipeline_mode<synchronous>, transform_indices = @transform_2, window_bounds = array<i64: 8, 1>}, {pipeline_mode = #tpu.pipeline_mode<synchronous>, transform_indices = @transform_3, window_bounds = array<i64: 8, 8>}, {pipeline_mode = #tpu.pipeline_mode<synchronous>, transform_indices = @transform_4, window_bounds = array<i64: 8, 1>}, {pipeline_mode = #tpu.pipeline_mode<synchronous>, transform_indices = @transform_5, window_bounds = array<i64: 2, 8>}, {pipeline_mode = #tpu.pipeline_mode<synchronous>, transform_indices = @transform_6, window_bounds = array<i64: 2, 1>}, {transform_indices = @transform_7, window_bounds = array<i64: 2, 128>}]} {
    %c0 = arith.constant 0 : index
    %c0_0 = arith.constant 0 : index
    %0 = vector.load %arg2[%c0, %c0_0] : memref<8x32xf32, #tpu.memory_space<vmem>>, vector<8x32xf32>
    %c0_1 = arith.constant 0 : index
    %c0_2 = arith.constant 0 : index
    %1 = vector.load %arg1[%c0_1, %c0_2] : memref<128x32xf32, #tpu.memory_space<vmem>>, vector<128x32xf32>
    %cst = arith.constant dense<0.000000e+00> : vector<8x128xf32>
    %2 = tpu.matmul %0, %1, %cst {dimension_numbers = #tpu.dot_dimension_numbers<[1], [1], [0], [0], [0, 0, 1, 0], [], []>} : vector<8x32xf32>, vector<128x32xf32>, vector<8x128xf32> -> vector<8x128xf32>
    %c0_3 = arith.constant 0 : index
    %c0_4 = arith.constant 0 : index
    %3 = vector.load %arg3[%c0_3, %c0_4] : memref<8x1xf32, #tpu.memory_space<vmem>>, vector<8x1xf32>
    %4 = vector.broadcast %3 : vector<8x1xf32> to vector<8x128xf32>
    %5 = arith.addf %2, %4 : vector<8x128xf32>
    %6 = math.tanh %5 : vector<8x128xf32>
    %c0_5 = arith.constant 0 : index
    %c0_6 = arith.constant 0 : index
    %7 = vector.load %arg4[%c0_5, %c0_6] : memref<8x8xf32, #tpu.memory_space<vmem>>, vector<8x8xf32>
    %cst_7 = arith.constant dense<0.000000e+00> : vector<8x128xf32>
    %8 = tpu.matmul %7, %6, %cst_7 {dimension_numbers = #tpu.dot_dimension_numbers<[1], [0], [0], [1], [0, 0, 1, 1], [], []>} : vector<8x8xf32>, vector<8x128xf32>, vector<8x128xf32> -> vector<8x128xf32>
    %c0_8 = arith.constant 0 : index
    %c0_9 = arith.constant 0 : index
    %9 = vector.load %arg5[%c0_8, %c0_9] : memref<8x1xf32, #tpu.memory_space<vmem>>, vector<8x1xf32>
    %10 = vector.broadcast %9 : vector<8x1xf32> to vector<8x128xf32>
    %11 = arith.addf %8, %10 : vector<8x128xf32>
    %12 = math.tanh %11 : vector<8x128xf32>
    %c0_10 = arith.constant 0 : index
    %c0_11 = arith.constant 0 : index
    %13 = vector.load %arg6[%c0_10, %c0_11] : memref<2x8xf32, #tpu.memory_space<vmem>>, vector<2x8xf32>
    %cst_12 = arith.constant dense<0.000000e+00> : vector<2x128xf32>
    %14 = tpu.matmul %13, %12, %cst_12 {dimension_numbers = #tpu.dot_dimension_numbers<[1], [0], [0], [1], [0, 0, 1, 1], [], []>} : vector<2x8xf32>, vector<8x128xf32>, vector<2x128xf32> -> vector<2x128xf32>
    %c0_13 = arith.constant 0 : index
    %c0_14 = arith.constant 0 : index
    %15 = vector.load %arg7[%c0_13, %c0_14] : memref<2x1xf32, #tpu.memory_space<vmem>>, vector<2x1xf32>
    %16 = vector.broadcast %15 : vector<2x1xf32> to vector<2x128xf32>
    %17 = arith.addf %14, %16 : vector<2x128xf32>
    %18 = arith.negf %17 : vector<2x128xf32>
    %19 = math.exp %18 : vector<2x128xf32>
    %cst_15 = arith.constant 1.000000e+00 : f32
    %20 = vector.broadcast %cst_15 : f32 to vector<2x128xf32>
    %21 = arith.addf %20, %19 : vector<2x128xf32>
    %22 = arith.divf %20, %21 : vector<2x128xf32>
    %c0_16 = arith.constant 0 : index
    %c0_17 = arith.constant 0 : index
    %23 = vector.load %arg8[%c0_16, %c0_17] : memref<2x128xf32, #tpu.memory_space<vmem>>, vector<2x128xf32>
    tpu.vector_store %arg8[%c0_16, %c0_17], %22 {strides = array<i32>} : memref<2x128xf32, #tpu.memory_space<vmem>>, vector<2x128xf32>,
    return
  }
  func.func @transform_0(%arg0: i32) -> (i32, i32) {
    %c0_i32 = arith.constant 0 : i32
    %c0_i32_0 = arith.constant 0 : i32
    return %arg0, %c0_i32 : i32, i32
  }
  func.func @transform_1(%arg0: i32) -> (i32, i32) {
    %c0_i32 = arith.constant 0 : i32
    %c0_i32_0 = arith.constant 0 : i32
    %c0_i32_1 = arith.constant 0 : i32
    return %c0_i32, %c0_i32_0 : i32, i32
  }
  func.func @transform_2(%arg0: i32) -> (i32, i32) {
    %c0_i32 = arith.constant 0 : i32
    %c0_i32_0 = arith.constant 0 : i32
    %c0_i32_1 = arith.constant 0 : i32
    return %c0_i32, %c0_i32_0 : i32, i32
  }
  func.func @transform_3(%arg0: i32) -> (i32, i32) {
    %c0_i32 = arith.constant 0 : i32
    %c0_i32_0 = arith.constant 0 : i32
    %c0_i32_1 = arith.constant 0 : i32
    return %c0_i32, %c0_i32_0 : i32, i32
  }
  func.func @transform_4(%arg0: i32) -> (i32, i32) {
    %c0_i32 = arith.constant 0 : i32
    %c0_i32_0 = arith.constant 0 : i32
    %c0_i32_1 = arith.constant 0 : i32
    return %c0_i32, %c0_i32_0 : i32, i32
  }
  func.func @transform_5(%arg0: i32) -> (i32, i32) {
    %c0_i32 = arith.constant 0 : i32
    %c0_i32_0 = arith.constant 0 : i32
    %c0_i32_1 = arith.constant 0 : i32
    return %c0_i32, %c0_i32_0 : i32, i32
  }
  func.func @transform_6(%arg0: i32) -> (i32, i32) {
    %c0_i32 = arith.constant 0 : i32
    %c0_i32_0 = arith.constant 0 : i32
    %c0_i32_1 = arith.constant 0 : i32
    return %c0_i32, %c0_i32_0 : i32, i32
  }
  func.func @transform_7(%arg0: i32) -> (i32, i32) {
    %c0_i32 = arith.constant 0 : i32
    %c0_i32_0 = arith.constant 0 : i32
    return %c0_i32, %arg0 : i32, i32
  }
}

</mosaic_0001>

<bundles_post_ra>
// kernel: tpu_custom_call.1
= control target key start
LH: loop header
LB: loop body
LE: loop exit
PB: predicated region body
PF: predicated region fallthrough
CT: control target
= control target key end

     0   :  { %vm50_vm0 = vcmask 261120   ;;  %v513_v2 = vmov 0.0|0.0   ;;  %vm514_vm2 = vmmov 0   ;;  %v515_v5 = vmov 0.0   ;;  %s664_s0 = inlined_call_operand.vmem [shape: f32[8,32], index: 0, kind: input, shape index: {}]   ;;  %s665_s1 = inlined_call_operand.vmem [shape: f32[8,32], index: 1, kind: input, shape index: {}]   ;;  %s666_s2 = inlined_call_operand.vmem [shape: f32[8,1], index: 2, kind: input, shape index: {}]   ;;  %s667_s3 = inlined_call_operand.vmem [shape: f32[8,8], index: 3, kind: input, shape index: {}]   ;;  %s668_s4 = inlined_call_operand.vmem [shape: f32[8,1], index: 4, kind: input, shape index: {}]   ;;  %s669_s5 = inlined_call_operand.vmem [shape: f32[2,8], index: 5, kind: input, shape index: {}]   ;;  %s670_s6 = inlined_call_operand.vmem [shape: f32[2,1], index: 6, kind: input, shape index: {}]   ;;  %s671_s7 = inlined_call_operand.hbm [shape: f32[2,8], index: 7, kind: output, shape index: {}]  }
   0x1   :  { %v28_v0 = vld [vmem:[%s664_s0] sm:$0xff]  ;;  %v29_v1 = vld [vmem:[%s664_s0 + $0x8] sm:$0xff]  ;;  %442 = vmatprep.subr.bf16.mxu0 %v513_v2  ;;  %vm566_vm1 = vmpackc.low %vm50_vm0, %vm50_vm0  ;;  %429 = vmatprep.mubr.msk.f32.mxu0 %vm514_vm2, %v515_v5  ;;  %v516_v6 = vmov 0  }
   0x2   :  { %v443_v3 = vpack.c.bf16 %v29_v1, %v28_v0  ;;  %479 = vset.pattern.permute.xlu0 %v516_v6  ;;  %432 = vmatprep.subr.mxu1 %v515_v5  ;;  %v30_v7 = vld [vmem:[%s664_s0 + $0x10] sm:$0xff]  ;;  %v31_v8 = vld [vmem:[%s664_s0 + $0x18] sm:$0xff]  ;;  %v44_v9 = vld [vmem:[%s666_s2] sm:$0xff] }
   0x3   :  { %434 = vmatprep.mubr.msk.f32.mxu1 %vm514_vm2, %v515_v5  ;;  %480 = vset.pattern.permute.xlu1 %v516_v6 }
   0x4   :  { %445 = vmatpush3.bf16.xpose.msk.msra.mxu0 %vm566_vm1, %v443_v3 }
   0x5   :  { %446 = vmatprep.subr.bf16.mxu0 %v513_v2 }
   0x6   :  { %12 = vsyncpa [#allocation3], 0  ;;  %v447_v10 = vpack.c.bf16 %v31_v8, %v30_v7  ;;  %47 = vperm.xlu0 %479, %v44_v9   ;;  %v174_v11 = vld [vmem:[%s668_s4] sm:$0xff]  ;;  %v33_v13 = vld [vmem:[%s664_s0 + $0x28] sm:$0xff]  ;;  %vm180_vm3 = vcmask 64512  }
   0x7   :  { %v32_v12 = vld [vmem:[%s664_s0 + $0x20] sm:$0xff]  ;;  %v34_v15 = vld [vmem:[%s664_s0 + $0x30] sm:$0xff]  ;;  %v35_v16 = vld [vmem:[%s664_s0 + $0x38] sm:$0xff] }
   0x8   :  { %v451_v14 = vpack.c.bf16 %v33_v13, %v32_v12  ;;  %v455_v17 = vpack.c.bf16 %v35_v16, %v34_v15  ;;  %v36_v18 = vld [vmem:[%s664_s0 + $0x40] sm:$0xff]  ;;  %v37_v19 = vld [vmem:[%s664_s0 + $0x48] sm:$0xff]  ;;  %v38_v21 = vld [vmem:[%s664_s0 + $0x50] sm:$0xff] }
   0x9   :  { %v459_v20 = vpack.c.bf16 %v37_v19, %v36_v18  ;;  %v39_v22 = vld [vmem:[%s664_s0 + $0x58] sm:$0xff]  ;;  %v40_v24 = vld [vmem:[%s664_s0 + $0x60] sm:$0xff]  ;;  %v41_v25 = vld [vmem:[%s664_s0 + $0x68] sm:$0xff] }
   0xa   :  { %177 = vperm.xlu0 %479, %v174_v11   ;;  %v463_v23 = vpack.c.bf16 %v39_v22, %v38_v21  ;;  %v467_v26 = vpack.c.bf16 %v41_v25, %v40_v24  ;;  %v42_v27 = vld [vmem:[%s664_s0 + $0x70] sm:$0xff]  ;;  %v43_v28 = vld [vmem:[%s664_s0 + $0x78] sm:$0xff]  ;;  %v27_v30 = vld [vmem:[%s665_s1] sm:$0xff] }
   0xb   :  { %v471_v29 = vpack.c.bf16 %v43_v28, %v42_v27  ;;  %v173_v35 = vld [vmem:[%s667_s3] sm:$0xff] }
   0xc   :  { %449 = vmatpush3.bf16.xpose.msk.msra.mxu0 %vm566_vm1, %v447_v10  ;;  %v256_v37 = vld [vmem:[%s670_s6] sm:$0x3]  ;;  %s517_s6 = smov [#allocation2]  }
   0xd   :  { %450 = vmatprep.subr.bf16.mxu0 %v513_v2  ;;  %259 = vperm.xlu1 %480, %v256_v37   ;;  %v255_v42 = vld [vmem:[%s669_s5] sm:$0x3]  ;;  %s348_s2 = sshll.u32 %s517_s6, 4  ;;  %s349_s2 = int_to_ptr.vmem [resolvable:$true] %s348_s2 }
   0xe   :  { %s489_s4 = scalar_lea.vmem %s349_s2, 32  ;;  %p494_p1 = scmp.lt.s32.totalorder %s349_s2, %s349_s2 }
   0xf   :  { %p490_p0 = scmp.ne.s32.totalorder %s349_s2, %s489_s4  ;;  %p495_p2 = scmp.lt.s32.totalorder %s489_s4, %s489_s4 }
  0x11   :  { %p496_p3 = por %p495_p2, %p494_p1 }
  0x13   :  { %p497_p4 = pnand %p496_p3, %p490_p0 }
  0x14   :  { %453 = vmatpush3.bf16.xpose.msk.msra.mxu0 %vm566_vm1, %v451_v14 }
  0x15   :  { %454 = vmatprep.subr.bf16.mxu0 %v513_v2 }
  0x1c   :  { %457 = vmatpush3.bf16.xpose.msk.msra.mxu0 %vm566_vm1, %v455_v17 }
  0x1d   :  { %458 = vmatprep.subr.bf16.mxu0 %v513_v2 }
  0x24   :  { %461 = vmatpush3.bf16.xpose.msk.msra.mxu0 %vm566_vm1, %v459_v20 }
  0x25   :  { %462 = vmatprep.subr.bf16.mxu0 %v513_v2 }
  0x2c   :  { %465 = vmatpush3.bf16.xpose.msk.msra.mxu0 %vm566_vm1, %v463_v23 }
  0x2d   :  { %466 = vmatprep.subr.bf16.mxu0 %v513_v2 }
  0x34   :  { %469 = vmatpush3.bf16.xpose.msk.msra.mxu0 %vm566_vm1, %v467_v26 }
  0x35   :  { %470 = vmatprep.subr.bf16.mxu0 %v513_v2 }
  0x3c   :  { %473 = vmatpush3.bf16.xpose.msk.msra.mxu0 %vm566_vm1, %v471_v29 }
  0x43   :  { %430 = vmatmul.mubr.msk.f32.vlgmr.msra.gmra.mrb[0].mxu0 %vm50_vm0, %v27_v30 }
  0x85   :  { %v48_v31 = vpop.permute.xlu0 %47 }
  0x89   :  { %v178_v38 = vpop.permute.xlu0 %177 }
  0x8c   :  { %v260_v44 = vpop.permute.xlu1 %259 }
 0x116   :  { %v168_v32 = vpop.f32.mrb[0].mxu0 }
 0x117   :  { %v169_v33 = vadd.f32 %v168_v32, %v48_v31  ;;  %v431_v34 = vpop.f32.mrb[1].mxu0 }
 0x119   :  { %481 = vtanh.f32 %v169_v33 }
 0x123   :  { %v482_v36 = vpop.eup %481 }
 0x124   :  { %433 = vmatpush3.msra.mxu1 %v482_v36 }
 0x125   :  { %435 = vmatmul.mubr.msk.f32.vlgmr.msra.gmra.mrb[0].mxu1 %vm180_vm3, %v173_v35  ;;  %437 = vmatprep.subr.mxu1 %v515_v5 }
 0x126   :  { %439 = vmatprep.mubr.msk.f32.mxu1 %vm514_vm2, %v515_v5 }
 0x1f8   :  { %v250_v39 = vpop.f32.mrb[0].mxu1 }
 0x1f9   :  { %v251_v40 = vadd.f32 %v250_v39, %v178_v38  ;;  %v436_v41 = vpop.f32.mrb[1].mxu1 }
 0x1fb   :  { %483 = vtanh.f32 %v251_v40 }
 0x205   :  { %v484_v43 = vpop.eup %483 }
 0x206   :  { %438 = vmatpush3.msra.mxu1 %v484_v43 }
 0x207   :  { %440 = vmatmul.mubr.msk.f32.vlgmr.msra.gmra.mrb[2].mxu1 %vm180_vm3, %v255_v42 }
 0x2da   :  { %v331_v45 = vpop.f32.mrb[2].mxu1 }
 0x2db   :  { %v332_v46 = vadd.f32 %v331_v45, %v260_v44  ;;  %v441_v47 = vpop.f32.mrb[3].mxu1 }
 0x2dd   :  { %v375_v48 = vmul.f32 -1.442695, %v332_v46 }
 0x2df   :  { %485 = vpow2.f32 %v375_v48 }
 0x2e9   :  { %v486_v49 = vpop.eup %485 }
 0x2ea   :  { %v338_v50 = vadd.f32 1.0, %v486_v49 }
 0x2ec   :  { %487 = vrcp.f32 %v338_v50 }
 0x2f6   :  { %v488_v51 = vpop.eup %487 }
 0x2f7   :  { %341 = vst [vmem:[#allocation2] sm:$0x3] %v488_v51 }
 0x2f8   :  { %500 = shalt.err (!%p497_p4)
}
 0x2f9   :  { %s501_s18 = scalar_lea.hbm %s671_s7, 32 }
 0x2fa   :  { %p502_p5 = scmp.ne.s32.totalorder %s671_s7, %s501_s18  ;;  %p505_p6 = scmp.lt.u32.totalorder %s501_s18, %s671_s7 }
 0x2fc   :  { %p507_p7 = pnand %p505_p6, %p502_p5 }
 0x2fe   :  { %510 = shalt.err (!%p507_p7)
}
 0x2ff   :  { %351 = dma.vmem_to_hbm [thread:$0]  %s349_s2, 32, %s671_s7, [#allocation3]  }
 0x300   :  { %511 = dma.done.wait [#allocation3], 32  }
 0x301   :  { %512 = vsyncadd [#allocation3], 4294967264 }
 0x302   :  { %355 = vsyncpa [#allocation3], 1 }

</bundles_post_ra>
